<compile_context>
chip_gen: v7x
topology: tpu7x:2x2x1
jax: 0.10.0
libtpu: 0.0.40
codegen_flags: <defaults>
</compile_context>

<pallas_src>
import functools

import jax
import jax.numpy as jnp
from jax import lax
from jax.experimental import pallas as pl
from jax.experimental.pallas import tpu as pltpu

_EPS = 1e-8


# ---------------------------------------------------------------------------
# VMEM budgeting (generation aware: v7x = 64 MiB physical, v5e/v6e = 128 MiB)
# ---------------------------------------------------------------------------
def _vmem_budget_bytes():
    cap = 64 << 20                      # conservative default = v7x physical VMEM
    try:
        info = pltpu.get_tpu_info()
        cap_attr = getattr(info, "vmem_capacity_bytes", None)
        if cap_attr:
            cap = int(cap_attr)
    except Exception:
        pass
    return int(cap) * 7 // 8            # headroom for Mosaic-internal scratch


# ---------------------------------------------------------------------------
# Monolithic kernel (moderate B): both [B, D] inputs resident in VMEM,
# ONE MXU matmul; graph->text stats from column-axis reductions of the same
# [B, B] similarity (no sim.T, no second gemm). 5 scalar results -> SMEM.
# ---------------------------------------------------------------------------
def _contrastive_kernel(text_ref, graph_ref, out_ref, *, inv_temperature):
    tf = text_ref[...].astype(jnp.float32)   # [B, D]
    gf = graph_ref[...].astype(jnp.float32)  # [B, D]
    B = tf.shape[0]
    mxu_dtype = text_ref.dtype               # bf16 stays bf16 on the MXU

    # L2 normalize via rsqrt (EUP); fold 1/temperature into the text side so
    # the [B, B] similarity never needs an elementwise rescale.
    t_inv = lax.rsqrt(jnp.maximum(jnp.sum(tf * tf, axis=1, keepdims=True), _EPS * _EPS))
    g_inv = lax.rsqrt(jnp.maximum(jnp.sum(gf * gf, axis=1, keepdims=True), _EPS * _EPS))
    tn = tf * (t_inv * inv_temperature)      # normalized text, scaled by 1/T
    gn = gf * g_inv                          # normalized graph

    # f32-precise diagonal of the scaled similarity, for the CE terms.
    diag = jnp.sum(tn * gn, axis=1, keepdims=True)      # [B, 1]
    sum_diag = jnp.sum(diag)

    dims = (((1,), (1,)), ((), ()))          # contract over embedding dim
    sim = lax.dot_general(tn.astype(mxu_dtype), gn.astype(mxu_dtype), dims,
                          preferred_element_type=jnp.float32)   # [B, B]

    row = lax.broadcasted_iota(jnp.int32, (B, B), 0)
    col = lax.broadcasted_iota(jnp.int32, (B, B), 1)
    sim_diag_only = jnp.where(row == col, sim, 0.0)
    inv_b = 1.0 / B

    # --- text -> graph: row-wise (lane) stats --------------------------------
    m_row = jnp.max(sim, axis=1, keepdims=True)
    lse_row = m_row + jnp.log(jnp.sum(jnp.exp(sim - m_row), axis=1, keepdims=True))
    t2g_loss = (jnp.sum(lse_row) - sum_diag) * inv_b
    diag_row = jnp.sum(sim_diag_only, axis=1, keepdims=True)
    t2g_acc = jnp.sum((m_row == diag_row).astype(jnp.float32)) * inv_b

    # --- graph -> text: column-wise (sublane/XLU) stats, no second gemm ------
    m_col = jnp.max(sim, axis=0, keepdims=True)
    lse_col = m_col + jnp.log(jnp.sum(jnp.exp(sim - m_col), axis=0, keepdims=True))
    g2t_loss = (jnp.sum(lse_col) - sum_diag) * inv_b
    diag_col = jnp.sum(sim_diag_only, axis=0, keepdims=True)
    g2t_acc = jnp.sum((m_col == diag_col).astype(jnp.float32)) * inv_b

    out_ref[0] = t2g_loss + g2t_loss
    out_ref[1] = t2g_loss
    out_ref[2] = g2t_loss
    out_ref[3] = t2g_acc
    out_ref[4] = g2t_acc


# ---------------------------------------------------------------------------
# Row-tiled path (large B): one gemm per row block, normalization fused,
# graph kept raw + resident (single-buffered), column stats via online softmax.
# ---------------------------------------------------------------------------
def _contrastive_tiled_kernel(text_ref, graph_ref, ginv_ref, out_ref,
                              col_m_ref, col_l_ref, col_diag_ref, acc_ref,
                              *, row_block, inv_temperature):
    i = pl.program_id(0)
    n_blk = pl.num_programs(0)
    B = graph_ref.shape[0]
    rb = row_block
    mxu_dtype = graph_ref.dtype

    @pl.when(i == 0)
    def _():
        col_m_ref[...] = jnp.full(col_m_ref.shape, -jnp.inf, dtype=jnp.float32)
        col_l_ref[...] = jnp.zeros(col_l_ref.shape, jnp.float32)
        col_diag_ref[...] = jnp.zeros(col_diag_ref.shape, jnp.float32)
        acc_ref[0] = 0.0   # sum of row LSE            (text -> graph)
        acc_ref[1] = 0.0   # correct-row count         (text -> graph)
        acc_ref[2] = 0.0   # sum of f32 diag of scaled sim (both directions)

    # ---- fused per-block text normalization (no separate normalize pass) ----
    tf = text_ref[...].astype(jnp.float32)                       # [rb, D]
    t_inv = lax.rsqrt(jnp.maximum(jnp.sum(tf * tf, axis=1, keepdims=True),
                                  _EPS * _EPS))
    tn = tf * (t_inv * inv_temperature)                          # [rb, D] f32

    # f32-precise diagonal for the CE terms.
    r0 = pl.multiple_of(i * rb, rb)
    g_blk = graph_ref[pl.ds(r0, rb), :].astype(jnp.float32)      # [rb, D]
    g_inv_blk = lax.rsqrt(jnp.maximum(jnp.sum(g_blk * g_blk, axis=1, keepdims=True),
                                      _EPS * _EPS))
    diag = jnp.sum(tn * g_blk, axis=1, keepdims=True) * g_inv_blk   # [rb, 1]

    # ---- ONE gemm per step: raw graph, columns rescaled by resident 1/||g|| ----
    dims = (((1,), (1,)), ((), ()))
    sim = lax.dot_general(tn.astype(mxu_dtype), graph_ref[...], dims,
                          preferred_element_type=jnp.float32)    # [rb, B]
    sim = sim * ginv_ref[...]                                    # [1, B] broadcast

    local_row = lax.broadcasted_iota(jnp.int32, (rb, B), 0)
    col = lax.broadcasted_iota(jnp.int32, (rb, B), 1)
    sim_diag_only = jnp.where((col - local_row) == i * rb, sim, 0.0)

    # ---- text -> graph: exact within the block (full row visible) -----------
    m_row = jnp.max(sim, axis=1, keepdims=True)
    lse_row = m_row + jnp.log(jnp.sum(jnp.exp(sim - m_row), axis=1, keepdims=True))
    diag_row = jnp.sum(sim_diag_only, axis=1, keepdims=True)
    acc_ref[0] = acc_ref[0] + jnp.sum(lse_row)
    acc_ref[1] = acc_ref[1] + jnp.sum((m_row == diag_row).astype(jnp.float32))
    acc_ref[2] = acc_ref[2] + jnp.sum(diag)

    # ---- graph -> text: online softmax over columns --------------------------
    blk_col_max = jnp.max(sim, axis=0, keepdims=True)            # [1, B]
    m_new = jnp.maximum(col_m_ref[...], blk_col_max)
    col_l_ref[...] = (col_l_ref[...] * jnp.exp(col_m_ref[...] - m_new)
                      + jnp.sum(jnp.exp(sim - m_new), axis=0, keepdims=True))
    col_m_ref[...] = m_new
    col_diag_ref[...] = col_diag_ref[...] + jnp.sum(sim_diag_only, axis=0,
                                                    keepdims=True)

    # ---- finalize only on the last (sequential) step -------------------------
    @pl.when(i == n_blk - 1)
    def _():
        inv_b = 1.0 / B
        sum_diag = acc_ref[2]
        t2g_loss = (acc_ref[0] - sum_diag) * inv_b
        lse_col = col_m_ref[...] + jnp.log(col_l_ref[...])
        g2t_loss = (jnp.sum(lse_col) - sum_diag) * inv_b
        g2t_acc = jnp.sum((col_m_ref[...] == col_diag_ref[...]).astype(jnp.float32)) * inv_b
        out_ref[0] = t2g_loss + g2t_loss
        out_ref[1] = t2g_loss
        out_ref[2] = g2t_loss
        out_ref[3] = acc_ref[1] * inv_b
        out_ref[4] = g2t_acc


# ---------------------------------------------------------------------------
# Wrappers
# ---------------------------------------------------------------------------
def _pack(out):
    return {
        "loss": out[0],
        "text_to_graph_loss": out[1],
        "graph_to_text_loss": out[2],
        "text_to_graph_acc": out[3],
        "graph_to_text_acc": out[4],
    }


def _xla_reference(text, graph, temperature):
    """Plain-XLA forward (also used as fallback for tiny, lane-sparse batches)."""
    tn = text / jnp.maximum(jnp.linalg.norm(text, axis=1, keepdims=True), _EPS)
    gn = graph / jnp.maximum(jnp.linalg.norm(graph, axis=1, keepdims=True), _EPS)
    sim = (tn @ gn.T) / temperature
    labels = jnp.arange(sim.shape[0])

    def ce(s):
        return jnp.mean(jax.nn.logsumexp(s, axis=1) - jnp.diagonal(s))

    def acc(s):
        return jnp.mean((jnp.argmax(s, axis=1) == labels).astype(jnp.float32))

    t2g, g2t = ce(sim), ce(sim.T)
    return {
        "loss": t2g + g2t,
        "text_to_graph_loss": t2g,
        "graph_to_text_loss": g2t,
        "text_to_graph_acc": acc(sim),
        "graph_to_text_acc": acc(sim.T),
    }


def _monolithic_vmem_estimate(B, D, esz):
    # one f32 [B,B] sim + exp/mask/select temporaries + f32 tn/gn + raw inputs
    return 5 * B * B * 4 + 4 * B * D * 4 + 2 * B * D * esz + (2 << 20)


def _monolithic_pallas(text, graph, temperature):
    B, D = text.shape
    esz = jnp.dtype(text.dtype).itemsize
    budget = _vmem_budget_bytes()
    vmem_limit = int(min(budget, max(_monolithic_vmem_estimate(B, D, esz), 32 << 20)))

    kernel = functools.partial(_contrastive_kernel,
                               inv_temperature=float(1.0 / temperature))
    out = pl.pallas_call(
        kernel,
        out_shape=jax.ShapeDtypeStruct((5,), jnp.float32),
        in_specs=[
            pl.BlockSpec(memory_space=pltpu.MemorySpace.VMEM),
            pl.BlockSpec(memory_space=pltpu.MemorySpace.VMEM),
        ],
        out_specs=pl.BlockSpec(memory_space=pltpu.MemorySpace.SMEM),
        compiler_params=pltpu.CompilerParams(vmem_limit_bytes=vmem_limit),
    )(text, graph)
    return _pack(out)


def _pick_row_block(B, D, esz, budget):
    """Largest MXU-friendly (multiple-of-64) row block dividing B that fits."""
    resident = B * D * esz + 4 * 8 * B * 4 + (2 << 20)   # raw graph + col scratch
    fallback = None
    for rb in (512, 256, 128, 64):
        if B % rb:
            continue
        fallback = rb                                    # smallest divisor so far
        working = 2 * rb * D * esz + 5 * rb * B * 4      # text pipeline + sim/exp/mask
        if resident + working <= budget:
            return rb
    # TODO(synk): nothing fits -> a 2-D (column-blocked) tiled kernel is needed;
    # fall back to the smallest valid block and rely on the vmem limit clamp.
    return fallback


def _tiled_pallas(text, graph, temperature, row_block):
    B, D = text.shape
    esz = jnp.dtype(text.dtype).itemsize
    n_blocks = B // row_block
    budget = _vmem_budget_bytes()

    # Per-column inverse norms in lane layout [1, B]. Tiny XLA pre-pass (reads
    # graph once, writes 4*B bytes) that avoids an in-kernel sublane->lane
    # relayout; the graph itself is NOT pre-normalized, so no normalized [B, D]
    # copy is written to / re-read from HBM.
    gf = graph.astype(jnp.float32)
    g_inv_row = lax.rsqrt(
        jnp.maximum(jnp.sum(gf * gf, axis=1), _EPS * _EPS)).reshape(1, B)

    vmem_est = (B * D * esz + 2 * row_block * D * esz + 5 * row_block * B * 4
                + 4 * 8 * B * 4 + (2 << 20))
    vmem_limit = int(min(budget, max(vmem_est, 32 << 20)))

    kernel = functools.partial(_contrastive_tiled_kernel,
                               row_block=row_block,
                               inv_temperature=float(1.0 / temperature))
    out = pl.pallas_call(
        kernel,
        out_shape=jax.ShapeDtypeStruct((5,), jnp.float32),
        grid=(n_blocks,),
        in_specs=[
            # text: streamed row blocks (pipelined DMA)
            pl.BlockSpec((row_block, D), lambda i: (i, 0)),
            # graph: whole-array, single-buffered resident VMEM operand
            pl.BlockSpec(memory_space=pltpu.MemorySpace.VMEM),
            # 1/||g|| per column, [1, B] f32, resident
            pl.BlockSpec(memory_space=pltpu.MemorySpace.VMEM),
        ],
        out_specs=pl.BlockSpec(memory_space=pltpu.MemorySpace.SMEM),
        scratch_shapes=[
            pltpu.VMEM((1, B), jnp.float32),   # running column max
            pltpu.VMEM((1, B), jnp.float32),   # running column sum(exp)
            pltpu.VMEM((1, B), jnp.float32),   # column diagonal (lane layout)
            pltpu.SMEM((4,), jnp.float32),     # scalar accumulators
        ],
        compiler_params=pltpu.CompilerParams(
            # sequential reduction across row blocks
            # TODO(synk): v7x 2-TC split needs per-core partial outputs.
            dimension_semantics=("arbitrary",),
            vmem_limit_bytes=vmem_limit),
    )(text, graph, g_inv_row)
    return _pack(out)


def batch_contrastive_loss(text_embeddings, graph_embeddings, temperature=0.07,
                           *, min_pallas_batch=128, row_block=None,
                           use_bf16_matmul=False, force_pallas=False):
    """Pallas equivalent of BatchContrastiveLoss.forward.

    The hard-negative arguments of the PyTorch module are never consumed by its
    forward pass, so they are intentionally omitted here.
    """
    if text_embeddings.shape != graph_embeddings.shape:
        raise ValueError(
            f"Text embeddings shape {text_embeddings.shape} does not match "
            f"graph embeddings shape {graph_embeddings.shape}")

    text, graph = text_embeddings, graph_embeddings
    if text.dtype == jnp.float64:
        text, graph = text.astype(jnp.float32), graph.astype(jnp.float32)
    if use_bf16_matmul and text.dtype != jnp.bfloat16:
        # Optional bf16 gemm path (f32 accumulation / LSE retained in-kernel).
        text, graph = text.astype(jnp.bfloat16), graph.astype(jnp.bfloat16)

    B, D = text.shape

    # Tiny batches are lane-sparse and overhead-dominated -> plain XLA.
    if not force_pallas and B < min_pallas_batch:
        return _xla_reference(text, graph, temperature)

    budget = _vmem_budget_bytes()
    esz = jnp.dtype(text.dtype).itemsize
    if row_block is None and _monolithic_vmem_estimate(B, D, esz) > budget:
        row_block = _pick_row_block(B, D, esz, budget)

    if row_block is not None and row_block < B and B % row_block == 0:
        return _tiled_pallas(text, graph, temperature, row_block)

    # TODO(synk): very large B with no row_block divisor in {512,256,128,64}
    # falls back to the monolithic kernel and may exceed VMEM.
    return _monolithic_pallas(text, graph, temperature)


# ---------------------------------------------------------------------------
# Self-test
# ---------------------------------------------------------------------------
if __name__ == "__main__":
    base_key = jax.random.PRNGKey(0)

    def make_inputs(B, D, salt=0):
        kt, kg = jax.random.split(jax.random.fold_in(base_key, B * 1000 + D + salt))
        text = jax.random.normal(kt, (B, D), dtype=jnp.float32)
        # correlate graph with text so the diagonal is (robustly) the max
        graph = text + 0.5 * jax.random.normal(kg, (B, D), dtype=jnp.float32)
        return text, graph

    def check(B, D, **kwargs):
        text, graph = make_inputs(B, D)
        out = batch_contrastive_loss(text, graph, temperature=0.07, **kwargs)
        jax.block_until_ready(out)
        ref = _xla_reference(text, graph, 0.07)
        for name in ref:
            assert jnp.allclose(out[name], ref[name], atol=5e-4, rtol=5e-4), (
                name, out[name], ref[name])

    def check_bf16(B, D, **kwargs):
        text, graph = make_inputs(B, D, salt=777)
        tb, gb = text.astype(jnp.bfloat16), graph.astype(jnp.bfloat16)
        out = batch_contrastive_loss(tb, gb, temperature=0.07,
                                     force_pallas=True, **kwargs)
        jax.block_until_ready(out)
        ref = _xla_reference(tb.astype(jnp.float32), gb.astype(jnp.float32), 0.07)
        assert bool(jnp.isfinite(out["loss"])), out
        assert abs(float(out["loss"]) - float(ref["loss"])) < 0.3, (out, ref)
        assert float(out["text_to_graph_acc"]) == 1.0, out
        assert float(out["graph_to_text_acc"]) == 1.0, out

    # 1) tiny shape, forced through the monolithic Pallas kernel
    check(8, 32, force_pallas=True)
    # 2) lane-dense shape, default (monolithic) Pallas path
    check(128, 256)
    # 3) row-tiled streaming path (forced small so it runs quickly)
    check(128, 256, row_block=64)
    # 4) bf16 smoke tests (monolithic + tiled); loose tolerances by design
    check_bf16(128, 256)
    check_bf16(128, 256, row_block=64)

    print("KERNEL_OK")
</pallas_src>

<mosaic_0001>
module attributes {stable_mosaic.version = 11 : i64} {
  func.func @_contrastive_kernel(%arg0: memref<8x32xf32, #tpu.memory_space<vmem>>, %arg1: memref<8x32xf32, #tpu.memory_space<vmem>>, %arg2: memref<5xf32, #tpu.memory_space<smem>>) attributes {dimension_semantics = [], scalar_prefetch = 0 : i64, scratch_operands = 0 : i64, tpu.core_type = #tpu.core_type<tc>} {
    %c0 = arith.constant 0 : index
    %c0_0 = arith.constant 0 : index
    %0 = vector.load %arg0[%c0, %c0_0] : memref<8x32xf32, #tpu.memory_space<vmem>>, vector<8x32xf32>
    %c0_1 = arith.constant 0 : index
    %c0_2 = arith.constant 0 : index
    %1 = vector.load %arg1[%c0_1, %c0_2] : memref<8x32xf32, #tpu.memory_space<vmem>>, vector<8x32xf32>
    %2 = arith.mulf %0, %0 : vector<8x32xf32>
    %cst = arith.constant dense<0.000000e+00> : vector<8xf32>
    %3 = vector.multi_reduction <add>, %2, %cst [1] : vector<8x32xf32> to vector<8xf32>
    %4 = vector.shape_cast %3 : vector<8xf32> to vector<8x1xf32>
    %cst_3 = arith.constant 1.000000e-16 : f32
    %5 = vector.broadcast %cst_3 : f32 to vector<8x1xf32>
    %6 = arith.maximumf %4, %5 : vector<8x1xf32>
    %7 = math.rsqrt %6 : vector<8x1xf32>
    %8 = arith.mulf %1, %1 : vector<8x32xf32>
    %cst_4 = arith.constant dense<0.000000e+00> : vector<8xf32>
    %9 = vector.multi_reduction <add>, %8, %cst_4 [1] : vector<8x32xf32> to vector<8xf32>
    %10 = vector.shape_cast %9 : vector<8xf32> to vector<8x1xf32>
    %cst_5 = arith.constant 1.000000e-16 : f32
    %11 = vector.broadcast %cst_5 : f32 to vector<8x1xf32>
    %12 = arith.maximumf %10, %11 : vector<8x1xf32>
    %13 = math.rsqrt %12 : vector<8x1xf32>
    %cst_6 = arith.constant 14.2857141 : f32
    %14 = vector.broadcast %cst_6 : f32 to vector<8x1xf32>
    %15 = arith.mulf %7, %14 : vector<8x1xf32>
    %16 = vector.broadcast %15 : vector<8x1xf32> to vector<8x32xf32>
    %17 = arith.mulf %0, %16 : vector<8x32xf32>
    %18 = vector.broadcast %13 : vector<8x1xf32> to vector<8x32xf32>
    %19 = arith.mulf %1, %18 : vector<8x32xf32>
    %20 = arith.mulf %17, %19 : vector<8x32xf32>
    %cst_7 = arith.constant dense<0.000000e+00> : vector<8xf32>
    %21 = vector.multi_reduction <add>, %20, %cst_7 [1] : vector<8x32xf32> to vector<8xf32>
    %22 = vector.shape_cast %21 : vector<8xf32> to vector<8x1xf32>
    %23 = vector.shape_cast %22 : vector<8x1xf32> to vector<1x8x1xf32>
    %cst_8 = arith.constant dense<0.000000e+00> : vector<1xf32>
    %24 = vector.multi_reduction <add>, %23, %cst_8 [1, 2] : vector<1x8x1xf32> to vector<1xf32>
    %25 = vector.shape_cast %24 : vector<1xf32> to vector<1x1x1xf32>
    %26 = vector.extract %25[0, 0, 0] : f32 from vector<1x1x1xf32>
    %cst_9 = arith.constant dense<0.000000e+00> : vector<8x8xf32>
    %27 = tpu.matmul %17, %19, %cst_9 {dimension_numbers = #tpu.dot_dimension_numbers<[1], [1], [0], [0], [0, 0, 1, 0], [], []>} : vector<8x32xf32>, vector<8x32xf32>, vector<8x8xf32> -> vector<8x8xf32>
    %28 = tpu.iota {dimensions = array<i32: 0>} : vector<8x8xi32>
    %29 = tpu.iota {dimensions = array<i32: 1>} : vector<8x8xi32>
    %30 = arith.cmpi eq, %28, %29 : vector<8x8xi32>
    %cst_10 = arith.constant 0.000000e+00 : f32
    %31 = vector.broadcast %cst_10 : f32 to vector<8x8xf32>
    %32 = arith.select %30, %27, %31 : vector<8x8xi1>, vector<8x8xf32>
    %cst_11 = arith.constant dense<0xFF800000> : vector<8xf32>
    %33 = vector.multi_reduction <maximumf>, %27, %cst_11 [1] : vector<8x8xf32> to vector<8xf32>
    %34 = vector.shape_cast %33 : vector<8xf32> to vector<8x1xf32>
    %35 = vector.broadcast %34 : vector<8x1xf32> to vector<8x8xf32>
    %36 = arith.subf %27, %35 : vector<8x8xf32>
    %37 = math.exp %36 : vector<8x8xf32>
    %cst_12 = arith.constant dense<0.000000e+00> : vector<8xf32>
    %38 = vector.multi_reduction <add>, %37, %cst_12 [1] : vector<8x8xf32> to vector<8xf32>
    %39 = vector.shape_cast %38 : vector<8xf32> to vector<8x1xf32>
    %40 = math.log %39 : vector<8x1xf32>
    %41 = arith.addf %34, %40 : vector<8x1xf32>
    %42 = vector.shape_cast %41 : vector<8x1xf32> to vector<1x8x1xf32>
    %cst_13 = arith.constant dense<0.000000e+00> : vector<1xf32>
    %43 = vector.multi_reduction <add>, %42, %cst_13 [1, 2] : vector<1x8x1xf32> to vector<1xf32>
    %44 = vector.shape_cast %43 : vector<1xf32> to vector<1x1x1xf32>
    %45 = vector.extract %44[0, 0, 0] : f32 from vector<1x1x1xf32>
    %46 = arith.subf %45, %26 : f32
    %cst_14 = arith.constant 1.250000e-01 : f32
    %47 = arith.mulf %46, %cst_14 : f32
    %cst_15 = arith.constant dense<0.000000e+00> : vector<8xf32>
    %48 = vector.multi_reduction <add>, %32, %cst_15 [1] : vector<8x8xf32> to vector<8xf32>
    %49 = vector.shape_cast %48 : vector<8xf32> to vector<8x1xf32>
    %50 = arith.cmpf oeq, %34, %49 : vector<8x1xf32>
    %51 = arith.extui %50 : vector<8x1xi1> to vector<8x1xi32>
    %52 = arith.sitofp %51 : vector<8x1xi32> to vector<8x1xf32>
    %53 = vector.shape_cast %52 : vector<8x1xf32> to vector<1x8x1xf32>
    %cst_16 = arith.constant dense<0.000000e+00> : vector<1xf32>
    %54 = vector.multi_reduction <add>, %53, %cst_16 [1, 2] : vector<1x8x1xf32> to vector<1xf32>
    %55 = vector.shape_cast %54 : vector<1xf32> to vector<1x1x1xf32>
    %56 = vector.extract %55[0, 0, 0] : f32 from vector<1x1x1xf32>
    %cst_17 = arith.constant 1.250000e-01 : f32
    %57 = arith.mulf %56, %cst_17 : f32
    %cst_18 = arith.constant dense<0xFF800000> : vector<8xf32>
    %58 = vector.multi_reduction <maximumf>, %27, %cst_18 [0] : vector<8x8xf32> to vector<8xf32>
    %59 = vector.shape_cast %58 : vector<8xf32> to vector<1x8xf32>
    %60 = vector.broadcast %59 : vector<1x8xf32> to vector<8x8xf32>
    %61 = arith.subf %27, %60 : vector<8x8xf32>
    %62 = math.exp %61 : vector<8x8xf32>
    %cst_19 = arith.constant dense<0.000000e+00> : vector<8xf32>
    %63 = vector.multi_reduction <add>, %62, %cst_19 [0] : vector<8x8xf32> to vector<8xf32>
    %64 = vector.shape_cast %63 : vector<8xf32> to vector<1x8xf32>
    %65 = math.log %64 : vector<1x8xf32>
    %66 = arith.addf %59, %65 : vector<1x8xf32>
    %67 = vector.shape_cast %66 : vector<1x8xf32> to vector<1x1x8xf32>
    %cst_20 = arith.constant dense<0.000000e+00> : vector<1xf32>
    %68 = vector.multi_reduction <add>, %67, %cst_20 [1, 2] : vector<1x1x8xf32> to vector<1xf32>
    %69 = vector.shape_cast %68 : vector<1xf32> to vector<1x1x1xf32>
    %70 = vector.extract %69[0, 0, 0] : f32 from vector<1x1x1xf32>
    %71 = arith.subf %70, %26 : f32
    %cst_21 = arith.constant 1.250000e-01 : f32
    %72 = arith.mulf %71, %cst_21 : f32
    %cst_22 = arith.constant dense<0.000000e+00> : vector<8xf32>
    %73 = vector.multi_reduction <add>, %32, %cst_22 [0] : vector<8x8xf32> to vector<8xf32>
    %74 = vector.shape_cast %73 : vector<8xf32> to vector<1x8xf32>
    %75 = arith.cmpf oeq, %59, %74 : vector<1x8xf32>
    %76 = arith.extui %75 : vector<1x8xi1> to vector<1x8xi32>
    %77 = arith.sitofp %76 : vector<1x8xi32> to vector<1x8xf32>
    %78 = vector.shape_cast %77 : vector<1x8xf32> to vector<1x1x8xf32>
    %cst_23 = arith.constant dense<0.000000e+00> : vector<1xf32>
    %79 = vector.multi_reduction <add>, %78, %cst_23 [1, 2] : vector<1x1x8xf32> to vector<1xf32>
    %80 = vector.shape_cast %79 : vector<1xf32> to vector<1x1x1xf32>
    %81 = vector.extract %80[0, 0, 0] : f32 from vector<1x1x1xf32>
    %cst_24 = arith.constant 1.250000e-01 : f32
    %82 = arith.mulf %81, %cst_24 : f32
    %83 = arith.addf %47, %72 : f32
    %c0_25 = arith.constant 0 : index
    %84 = memref.load %arg2[%c0_25] : memref<5xf32, #tpu.memory_space<smem>>
    memref.store %83, %arg2[%c0_25] : memref<5xf32, #tpu.memory_space<smem>>
    %c1 = arith.constant 1 : index
    %85 = memref.load %arg2[%c1] : memref<5xf32, #tpu.memory_space<smem>>
    memref.store %47, %arg2[%c1] : memref<5xf32, #tpu.memory_space<smem>>
    %c2 = arith.constant 2 : index
    %86 = memref.load %arg2[%c2] : memref<5xf32, #tpu.memory_space<smem>>
    memref.store %72, %arg2[%c2] : memref<5xf32, #tpu.memory_space<smem>>
    %c3 = arith.constant 3 : index
    %87 = memref.load %arg2[%c3] : memref<5xf32, #tpu.memory_space<smem>>
    memref.store %57, %arg2[%c3] : memref<5xf32, #tpu.memory_space<smem>>
    %c4 = arith.constant 4 : index
    %88 = memref.load %arg2[%c4] : memref<5xf32, #tpu.memory_space<smem>>
    memref.store %82, %arg2[%c4] : memref<5xf32, #tpu.memory_space<smem>>
    return
  }
}

</mosaic_0001>

<bundles_post_ra>
// kernel: tpu_custom_call.1
= control target key start
LH: loop header
LB: loop body
LE: loop exit
PB: predicated region body
PF: predicated region fallthrough
CT: control target
= control target key end

     0   :  { %7 = vsyncpa [#allocation3], 0  ;;  %s439_s0 = inlined_call_operand.hbm [shape: f32[8,32], index: 0, kind: input, shape index: {}]   ;;  %s440_s1 = inlined_call_operand.hbm [shape: f32[8,32], index: 1, kind: input, shape index: {}]   ;;  %s441_s2 = inlined_call_operand.hbm [shape: f32[5], index: 2, kind: output, shape index: {}]  }
   0x1   :  { %8 = vsyncpa [#allocation6], 0 }
   0x2   :  { %9 = vsyncpa [#allocation4], 0  ;;  %s369_s9 = smov [#allocation2]   ;;  %s370_s11 = smov [#allocation5]  }
   0x3   :  { %s16_s10 = sshll.u32 %s369_s9, 4  ;;  %s26_s12 = sshll.u32 %s370_s11, 4  ;;  %s17_s10 = int_to_ptr.vmem [resolvable:$true] %s16_s10  ;;  %s27_s12 = int_to_ptr.vmem [resolvable:$true] %s26_s12 }
   0x4   :  { %s309_s15 = scalar_lea.hbm %s439_s0, 128 }
   0x5   :  { %p310_p0 = scmp.ne.s32.totalorder %s439_s0, %s309_s15  ;;  %p313_p1 = scmp.lt.u32.totalorder %s309_s15, %s439_s0 }
   0x7   :  { %p315_p2 = pnand %p313_p1, %p310_p0 }
   0x9   :  { %318 = shalt.err (!%p315_p2)
}
   0xa   :  { %s319_s20 = scalar_lea.vmem %s17_s10, 128  ;;  %p324_p4 = scmp.lt.s32.totalorder %s17_s10, %s17_s10 }
   0xb   :  { %p320_p3 = scmp.ne.s32.totalorder %s17_s10, %s319_s20  ;;  %p325_p5 = scmp.lt.s32.totalorder %s319_s20, %s319_s20 }
   0xd   :  { %p326_p6 = por %p325_p5, %p324_p4 }
   0xf   :  { %p327_p7 = pnand %p326_p6, %p320_p3 }
  0x11   :  { %330 = shalt.err (!%p327_p7)
}
  0x12   :  { %19 = dma.hbm_to_vmem [thread:$0]  %s439_s0, 128, %s17_s10, [#allocation3]  }
  0x13   :  { %s331_s25 = scalar_lea.hbm %s440_s1, 128 }
  0x14   :  { %p332_p8 = scmp.ne.s32.totalorder %s440_s1, %s331_s25  ;;  %p335_p9 = scmp.lt.u32.totalorder %s331_s25, %s440_s1 }
  0x16   :  { %p337_p10 = pnand %p335_p9, %p332_p8 }
  0x18   :  { %340 = shalt.err (!%p337_p10)
}
  0x19   :  { %s341_s30 = scalar_lea.vmem %s27_s12, 128  ;;  %p346_p12 = scmp.lt.s32.totalorder %s27_s12, %s27_s12 }
  0x1a   :  { %p342_p11 = scmp.ne.s32.totalorder %s27_s12, %s341_s30  ;;  %p347_p13 = scmp.lt.s32.totalorder %s341_s30, %s341_s30 }
  0x1c   :  { %p348_p0 = por %p347_p13, %p346_p12 }
  0x1e   :  { %p349_p1 = pnand %p348_p0, %p342_p11 }
  0x20   :  { %352 = shalt.err (!%p349_p1)
}
  0x21   :  { %29 = dma.hbm_to_vmem [thread:$0]  %s440_s1, 128, %s27_s12, [#allocation6]  }
  0x22   :  { %363 = dma.done.wait [#allocation3], 128  }
  0x23   :  { %364 = vsyncadd [#allocation3], 4294967168 }
  0x24   :  { %365 = dma.done.wait [#allocation6], 128  }
  0x25   :  { %366 = vsyncadd [#allocation6], 4294967168  ;;  %v37_v0 = vld [vmem:[#allocation5] sm:$0xff]  ;;  %vm39_vm0 = vcmask 261120   ;;  %v36_v1 = vld [vmem:[#allocation2] sm:$0xff]  ;;  %v371_v6 = vmov 0.0   ;;  %v145_v17 = vlaneseq }
  0x26   :  { %v45_v2 = vmul.f32 %v37_v0, %v37_v0  ;;  %v38_v3 = vmul.f32 %v36_v1, %v36_v1  ;;  %277 = vmatprep.subr.mxu0 %v371_v6  ;;  %vm372_vm1 = vmmov 0   ;;  %vm151_vm2 = vcmask 64512   ;;  %s353_s17 = scalar_lea.hbm %s441_s2, 16 }
  0x27   :  { %279 = vmatprep.mubr.msk.f32.mxu0 %vm372_vm1, %v371_v6  ;;  %v146_v18 = vshrl.u32 %v145_v17, 7  ;;  %v148_v19 = vand.u32 127, %v145_v17  ;;  %vm58_vm6 = vcmask 7168   ;;  %vm212_vm7 = vcmask 57344   ;;  %p354_p2 = scmp.ne.s32.totalorder %s441_s2, %s353_s17  ;;  %p357_p3 = scmp.lt.u32.totalorder %s353_s17, %s441_s2 }
  0x28   :  { %v46_v4 = vsel %vm39_vm0, %v45_v2, 0.0  ;;  %v40_v5 = vsel %vm39_vm0, %v38_v3, 0.0 }
  0x29   :  { %47 = vadd.xlane.f32.xlu0 %v46_v4  ;;  %vm149_vm3 = vcmp.eq.s32.totalorder %v146_v18, %v148_v19  ;;  %p359_p4 = pnand %p357_p3, %p354_p2 }
  0x2d   :  { %41 = vadd.xlane.f32.xlu0 %v40_v5 }
  0xb6   :  { %v48_v7 = vpop.xlane.xlu0 %47 }
  0xb7   :  { %v49_v8 = vmax.f32 %v48_v7, 1e-16 }
  0xb9   :  { %297 = vrsqrt.f32 %v49_v8 }
  0xba   :  { %v42_v9 = vpop.xlane.xlu0 %41 }
  0xbb   :  { %v43_v10 = vmax.f32 %v42_v9, 1e-16 }
  0xbd   :  { %299 = vrsqrt.f32 %v43_v10 }
  0xc3   :  { %v298_v11 = vpop.eup %297 }
  0xc4   :  { %v53_v12 = vmul.f32 %v298_v11, %v37_v0 }
  0xc6   :  { %278 = vmatpush3.xpose.msk.msra.mxu0 %vm39_vm0, %v53_v12 }
  0xc7   :  { %v300_v13 = vpop.eup %299 }
  0xc8   :  { %v51_v14 = vmul.f32 14.285714, %v300_v13 }
  0xca   :  { %v52_v15 = vmul.f32 %v51_v14, %v36_v1 }
  0xcc   :  { %280 = vmatmul.mubr.msk.f32.vlgmr.msra.gmra.mrb[0].mxu0 %vm39_vm0, %v52_v15  ;;  %v54_v16 = vmul.f32 %v53_v12, %v52_v15 }
  0xce   :  { %v55_v55 = vsel %vm39_vm0, %v54_v16, 0.0 }
 0x19f   :  { %v141_v20 = vpop.f32.mrb[0].mxu0 }
 0x1a0   :  { %v281_v21 = vpop.f32.mrb[1].mxu0  ;;  %v152_v22 = vsel %vm151_vm2, %v141_v20, -inf  ;;  %v150_v23 = vsel %vm149_vm3, %v141_v20, 0.0 }
 0x1a1   :  { %153 = vmax.xlane.f32.xlu1 %v152_v22  ;;  %v193_v24 = vrot.slane %v152_v22, 4  ;;  %v176_v25 = vsel %vm151_vm2, %v150_v23, 0.0 }
 0x1a2   :  { %177 = vadd.xlane.f32.xlu0 %v176_v25  ;;  %v225_v26 = vrot.slane %v176_v25, 4 }
 0x1a3   :  { %v194_v27 = vmax.f32 %v152_v22, %v193_v24 }
 0x1a4   :  { %v226_v28 = vadd.f32 %v225_v26, %v176_v25 }
 0x1a5   :  { %v195_v29 = vrot.slane %v194_v27, 2 }
 0x1a6   :  { %v227_v30 = vrot.slane %v226_v28, 2 }
 0x1a7   :  { %v196_v31 = vmax.f32 %v194_v27, %v195_v29 }
 0x1a8   :  { %v228_v32 = vadd.f32 %v227_v30, %v226_v28 }
 0x1a9   :  { %v197_v33 = vrot.slane %v196_v31, 1 }
 0x1aa   :  { %v229_v34 = vrot.slane %v228_v32, 1 }
 0x1ab   :  { %v198_v35 = vmax.f32 %v196_v31, %v197_v33 }
 0x1ac   :  { %v230_v36 = vadd.f32 %v229_v34, %v228_v32 }
 0x1ad   :  { %v199_v37 = vsub.f32 %v141_v20, %v198_v35 }
 0x1ae   :  { %vm231_vm4 = vcmp.eq.f32.partialorder %v198_v35, %v230_v36 }
 0x1af   :  { %v200_v38 = vmul.f32 1.442695, %v199_v37  ;;  %v274_v62 = vsel %vm231_vm4, 1.0, %v371_v6 }
 0x1b0   :  { %v234_v1 = vsel %vm212_vm7, %v274_v62, 0.0 }
 0x1b1   :  { %301 = vpow2.f32 %v200_v38 }
 0x1bb   :  { %v302_v39 = vpop.eup %301 }
 0x1bc   :  { %v202_v40 = vsel %vm151_vm2, %v302_v39, 0.0 }
 0x1bd   :  { %v203_v41 = vrot.slane %v202_v40, 4 }
 0x1bf   :  { %v204_v42 = vadd.f32 %v203_v41, %v202_v40 }
 0x1c1   :  { %v205_v43 = vrot.slane %v204_v42, 2 }
 0x1c3   :  { %v206_v44 = vadd.f32 %v205_v43, %v204_v42 }
 0x1c5   :  { %v207_v45 = vrot.slane %v206_v44, 1 }
 0x1c7   :  { %v208_v46 = vadd.f32 %v207_v45, %v206_v44 }
 0x1c9   :  { %303 = vlog2.f32 %v208_v46 }
 0x1d3   :  { %v304_v47 = vpop.eup %303 }
 0x1d4   :  { %v210_v48 = vmul.f32 0.6931472, %v304_v47 }
 0x1d6   :  { %v211_v49 = vadd.f32 %v210_v48, %v198_v35 }
 0x1d8   :  { %v213_v4 = vsel %vm212_vm7, %v211_v49, 0.0 }
 0x22e   :  { %v154_v50 = vpop.xlane.xlu1 %153 }
 0x22f   :  { %v155_v51 = vsub.f32 %v141_v20, %v154_v50  ;;  %v178_v56 = vpop.xlane.xlu0 %177 }
 0x230   :  { %vm179_vm5 = vcmp.eq.f32.partialorder %v154_v50, %v178_v56 }
 0x231   :  { %v156_v52 = vmul.f32 1.442695, %v155_v51  ;;  %v273_v60 = vsel %vm179_vm5, 1.0, %v371_v6 }
 0x232   :  { %v182_v61 = vsel %vm58_vm6, %v273_v60, 0.0 }
 0x233   :  { %305 = vpow2.f32 %v156_v52 }
 0x23d   :  { %v306_v53 = vpop.eup %305 }
 0x23e   :  { %v158_v54 = vsel %vm151_vm2, %v306_v53, 0.0 }
 0x23f   :  { %159 = vadd.xlane.f32.xlu1 %v158_v54 }
 0x243   :  { %56 = vadd.xlane.f32.xlu1 %v55_v55 }
 0x2cc   :  { %v160_v57 = vpop.xlane.xlu1 %159 }
 0x2cd   :  { %307 = vlog2.f32 %v160_v57 }
 0x2d0   :  { %v57_v58 = vpop.xlane.xlu1 %56 }
 0x2d1   :  { %v59_v59 = vsel %vm58_vm6, %v57_v58, 0.0 }
 0x2d2   :  { %60 = vadd.xlane.f32.xlu0 %v59_v59 }
 0x2d6   :  { %183 = vadd.xlane.f32.xlu0 %v182_v61 }
 0x2d7   :  { %v308_v63 = vpop.eup %307 }
 0x2d8   :  { %v162_v0 = vmul.f32 0.6931472, %v308_v63 }
 0x2da   :  { %235 = vadd.xlane.f32.xlu0 %v234_v1  ;;  %v163_v2 = vadd.f32 %v162_v0, %v154_v50 }
 0x2dc   :  { %v164_v3 = vsel %vm58_vm6, %v163_v2, 0.0 }
 0x2dd   :  { %165 = vadd.xlane.f32.xlu1 %v164_v3 }
 0x2e1   :  { %214 = vadd.xlane.f32.xlu1 %v213_v4 }
 0x35f   :  { %v61_v5 = vpop.xlane.xlu0 %60 }
 0x360   :  { %v62_v7 = vrot.slane %v61_v5, 4 }
 0x362   :  { %v63_v8 = vadd.f32 %v62_v7, %v61_v5 }
 0x363   :  { %v184_v9 = vpop.xlane.xlu0 %183 }
 0x364   :  { %v64_v10 = vrot.slane %v63_v8, 2  ;;  %v185_v11 = vrot.slane %v184_v9, 4 }
 0x366   :  { %v186_v12 = vadd.f32 %v185_v11, %v184_v9  ;;  %v65_v13 = vadd.f32 %v64_v10, %v63_v8 }
 0x367   :  { %v236_v14 = vpop.xlane.xlu0 %235 }
 0x368   :  { %v237_v15 = vrot.slane %v236_v14, 4  ;;  %v66_v6 = vrot.slane %v65_v13, 1  ;;  %v187_v16 = vrot.slane %v186_v12, 2 }
 0x36a   :  { %v238_v17 = vadd.f32 %v237_v15, %v236_v14  ;;  %v166_v18 = vpop.xlane.xlu1 %165  ;;  %v67_v19 = vadd.f32 %v66_v6, %v65_v13  ;;  %v188_v24 = vadd.f32 %v187_v16, %v186_v12 }
 0x36b   :  { %v167_v20 = vrot.slane %v166_v18, 4 }
 0x36c   :  { %282 = vpush %v67_v19  ;;  %v239_v22 = vrot.slane %v238_v17, 2  ;;  %v189_v30 = vrot.slane %v188_v24, 1 }
 0x36d   :  { %v168_v21 = vadd.f32 %v167_v20, %v166_v18 }
 0x36e   :  { %v215_v23 = vpop.xlane.xlu1 %214  ;;  %v240_v29 = vadd.f32 %v239_v22, %v238_v17  ;;  %v190_v35 = vadd.f32 %v189_v30, %v188_v24 }
 0x36f   :  { %v169_v25 = vrot.slane %v168_v21, 2  ;;  %v216_v26 = vrot.slane %v215_v23, 4 }
 0x370   :  { %v241_v36 = vrot.slane %v240_v29, 1 }
 0x371   :  { %v217_v27 = vadd.f32 %v216_v26, %v215_v23  ;;  %v170_v28 = vadd.f32 %v169_v25, %v168_v21 }
 0x372   :  { %v242_v39 = vadd.f32 %v241_v36, %v240_v29 }
 0x373   :  { %v218_v31 = vrot.slane %v217_v27, 2  ;;  %v171_v32 = vrot.slane %v170_v28, 1 }
 0x375   :  { %v219_v33 = vadd.f32 %v218_v31, %v217_v27  ;;  %v172_v34 = vadd.f32 %v171_v32, %v170_v28 }
 0x377   :  { %284 = vpush %v172_v34  ;;  %v220_v37 = vrot.slane %v219_v33, 1 }
 0x378   :  { %286 = vpush %v190_v35 }
 0x379   :  { %v221_v38 = vadd.f32 %v220_v37, %v219_v33 }
 0x37b   :  { %288 = vpush %v221_v38 }
 0x37c   :  { %290 = vpush %v242_v39 }
 0x39d   :  { %s283_s1 = spop %282 }
 0x3a8   :  { %s285_s4 = spop %284 }
 0x3a9   :  { %s174_s5 = ssub.f32 %s285_s4, %s283_s1  ;;  %s287_s6 = spop %286 }
 0x3aa   :  { %s192_s7 = smul.f32 0.125, %s287_s6 }
 0x3ab   :  { %s175_s8 = smul.f32 0.125, %s174_s5 }
 0x3ac   :  { %253 = sst [smem:[#allocation7 + $0x3]] %s192_s7  ;;  %s289_s9 = spop %288 }
 0x3ad   :  { %249 = sst [smem:[#allocation7 + $0x1]] %s175_s8  ;;  %s291_s10 = spop %290 }
 0x3ae   :  { %s223_s11 = ssub.f32 %s289_s9, %s283_s1  ;;  %s244_s12 = smul.f32 0.125, %s291_s10 }
 0x3b0   :  { %s224_s13 = smul.f32 0.125, %s223_s11  ;;  %255 = sst [smem:[#allocation7 + $0x4]] %s244_s12 }
 0x3b2   :  { %s245_s14 = sadd.f32 %s224_s13, %s175_s8 }
 0x3b3   :  { %251 = sst [smem:[#allocation7 + $0x2]] %s224_s13 }
 0x3b4   :  { %247 = sst [smem:[#allocation7]] %s245_s14 }
 0x3b5   :  { %362 = shalt.err (!%p359_p4)
}
 0x3b6   :  { %s373_s22 = smov [#allocation7]  }
 0x3b7   :  { %263 = dma.smem_to_hbm %s373_s22, 16, %s441_s2, [#allocation4]  }
 0x3b8   :  { %367 = dma.done.wait [#allocation4], 16  }
 0x3b9   :  { %368 = vsyncadd [#allocation4], 4294967280 }
 0x3ba   :  { %267 = sfence }
 0x3bb   :  { %268 = vsyncpa [#allocation3], 1 }
 0x3bc   :  { %269 = vsyncpa [#allocation6], 1 }
 0x3bd   :  { %270 = vsyncpa [#allocation4], 1 }

</bundles_post_ra>
